<compile_context>
chip_gen: v7x
topology: tpu7x:2x2x1
jax: 0.10.0
libtpu: 0.0.40
codegen_flags: <defaults>
</compile_context>

<pallas_src>
import functools

import jax
import jax.numpy as jnp
from jax.experimental import pallas as pl
from jax.experimental.pallas import tpu as pltpu


F_PAD = 128      # lane-dense width for every matmul operand / store
H_GRP = 64       # lane group: lanes [0:64) = op-src features, [64:128) = m-src
ROW_ALIGN = 16   # sublane alignment (bf16 packs 16 rows / vreg)


# ------------------------------ fused kernel ------------------------------

def _gnn_fused_kernel(
    a_ref,                                   # (n_tot_p, n_tot_p) bf16 combined adjacency
    x_op_ref, x_m_ref,                       # packed node features (bf16)
    w_mt_ref, b_mt_ref,                      # m_trans_fc (bf16 / f32)
    w1_ref, b1_ref, w2_ref, b2_ref,          # (L,2,128,128) bf16 / (L,2,1,128) f32
    w_opfc_ref, b_opfc_ref, w_mfc_ref, b_mfc_ref,
    out_op_ref, out_m_ref,
    *, num_layers, n_op_p,
):
    f32 = jnp.float32
    bf16 = jnp.bfloat16

    # m feature transform Linear(4 -> in_dim), operating inside lane group 1.
    x_m0 = (jnp.dot(x_m_ref[...], w_mt_ref[...], preferred_element_type=f32)
            + b_mt_ref[...]).astype(bf16)
    x_stack = jnp.concatenate([x_op_ref[...], x_m0], axis=0)

    a_all = a_ref[...]  # hoisted: reused every layer

    def layer(li, x_stack):
        # One MXU pass aggregates all 4 edge types: op-src contributions land
        # in lanes [0:64), m-src contributions in lanes [64:128); op-dst rows
        # come first, m-dst rows after.
        agg = jnp.dot(a_all, x_stack, preferred_element_type=f32)
        agg_op = agg[:n_op_p].astype(bf16)
        agg_m = agg[n_op_p:].astype(bf16)

        # dst = op : blockdiag(W1_nn1, W1_nn3) -> ReLU -> Kcat[W2_nn1; W2_nn3]
        h = jnp.dot(agg_op, w1_ref[li, 0], preferred_element_type=f32) + b1_ref[li, 0]
        h = jnp.maximum(h, 0.0).astype(bf16)
        s_op = jnp.dot(h, w2_ref[li, 0], preferred_element_type=f32) + b2_ref[li, 0]

        # dst = m  : blockdiag(W1_nn2, W1_nn4) -> ReLU -> Kcat[W2_nn2; W2_nn4]
        h = jnp.dot(agg_m, w1_ref[li, 1], preferred_element_type=f32) + b1_ref[li, 1]
        h = jnp.maximum(h, 0.0).astype(bf16)
        s_m = jnp.dot(h, w2_ref[li, 1], preferred_element_type=f32) + b2_ref[li, 1]

        # F.leaky_relu (slope 0.01); zero-padded lanes stay exactly zero, so the
        # lane-group packing invariant survives into the next layer.
        x_op_new = jnp.where(s_op > 0, s_op, 0.01 * s_op).astype(bf16)
        x_m_new = jnp.where(s_m > 0, s_m, 0.01 * s_m).astype(bf16)
        return jnp.concatenate([x_op_new, x_m_new], axis=0)

    if num_layers <= 4:
        for li in range(num_layers):          # short fixed trip count: unroll
            x_stack = layer(li, x_stack)
    else:                                     # deep stacks: bound live ranges
        x_stack = jax.lax.fori_loop(0, num_layers, layer, x_stack)

    out_op_ref[...] = (jnp.dot(x_stack[:n_op_p], w_opfc_ref[...],
                               preferred_element_type=f32) + b_opfc_ref[...])
    out_m_ref[...] = (jnp.dot(x_stack[n_op_p:], w_mfc_ref[...],
                              preferred_element_type=f32) + b_mfc_ref[...])


# ----------------------------- padding helpers -----------------------------

def _round_up(n, m):
    return ((n + m - 1) // m) * m


def _embed(shape, *placements):
    """Zero array of `shape` with 2-D blocks placed at (row_off, col_off)."""
    out = jnp.zeros(shape, jnp.float32)
    for (r, c, blk) in placements:
        out = out.at[r:r + blk.shape[0], c:c + blk.shape[1]].set(blk)
    return out


def _pack_layer_weights(lp):
    """Pack nn1..nn4 of one HeteroConv layer into lane-group fused slabs."""
    def pack(nn_src_op, nn_src_m, out_off):
        w1a, b1a, w2a, b2a = nn_src_op        # branch fed by op-src lanes [0:64)
        w1b, b1b, w2b, b2b = nn_src_m         # branch fed by m-src lanes [64:128)
        w1 = _embed((F_PAD, F_PAD), (0, 0, w1a), (H_GRP, H_GRP, w1b))
        b1 = _embed((1, F_PAD), (0, 0, b1a), (0, H_GRP, b1b))
        w2 = _embed((F_PAD, F_PAD), (0, out_off, w2a), (H_GRP, out_off, w2b))
        b2 = _embed((1, F_PAD), (0, out_off, b2a + b2b))   # '+' of branches
        return w1, b1, w2, b2

    # dst=op uses nn1 (op->op) + nn3 (m->op); output into lane group 0.
    w1o, b1o, w2o, b2o = pack(lp["nn1"], lp["nn3"], 0)
    # dst=m uses nn2 (op->m) + nn4 (m->m); output into lane group 1.
    w1m, b1m, w2m, b2m = pack(lp["nn2"], lp["nn4"], H_GRP)
    return (jnp.stack([w1o, w1m]), jnp.stack([b1o, b1m]),
            jnp.stack([w2o, w2m]), jnp.stack([b2o, b2m]))


def _vmem_limit_bytes(n_op_p, n_m_p, num_layers):
    n_tot = n_op_p + n_m_p
    n_w = 3 + 4 * num_layers                       # weight slabs (128x128 bf16)
    need = (2 * n_tot * n_tot                      # bf16 adjacency
            + 2 * n_tot * F_PAD                    # bf16 input features
            + 4 * 2 * n_tot * F_PAD                # f32 outputs
            + 2 * n_w * F_PAD * F_PAD              # bf16 weights
            + 4 * n_w * F_PAD                      # f32 biases
            + 8 * 4 * n_tot * F_PAD)               # activation temporaries
    return int(min(max(2 * need + (8 << 20), 32 << 20), 64 << 20))


def _cost_estimate(n_op_p, n_m_p, num_layers):
    n_tot = n_op_p + n_m_p
    mm = lambda m, k, n: 2 * m * k * n
    flops = mm(n_m_p, F_PAD, F_PAD)                                   # m_trans
    flops += num_layers * (mm(n_tot, n_tot, F_PAD)                    # fused agg
                           + 2 * mm(n_op_p, F_PAD, F_PAD)             # op-dst MLP
                           + 2 * mm(n_m_p, F_PAD, F_PAD))             # m-dst MLP
    flops += mm(n_op_p, F_PAD, F_PAD) + mm(n_m_p, F_PAD, F_PAD)       # output fc
    n_w = 3 + 4 * num_layers
    bytes_accessed = (2 * n_tot * n_tot + 2 * n_tot * F_PAD
                      + 4 * 2 * n_tot * F_PAD
                      + 2 * n_w * F_PAD * F_PAD + 4 * n_w * F_PAD)
    return pl.CostEstimate(flops=flops, transcendentals=0,
                           bytes_accessed=bytes_accessed)


# ------------------------------- forward pass -------------------------------

def gnn_forward(params, x_op, x_m_raw, adj, hidden_dim):
    num_layers = len(params["layers"])
    n_op, f_op = x_op.shape
    n_m, f_m = x_m_raw.shape
    in_dim = params["m_trans"][0].shape[1]
    assert f_op <= H_GRP and f_m <= H_GRP and in_dim <= H_GRP and hidden_dim <= H_GRP

    n_op_p = _round_up(n_op, ROW_ALIGN)
    n_m_p = _round_up(n_m, ROW_ALIGN)
    n_tot_p = n_op_p + n_m_p
    bf16 = jnp.bfloat16

    # Node features, lane-group packed (op -> lanes [0:64), raw m -> [64:128)).
    x_op_p = _embed((n_op_p, F_PAD), (0, 0, x_op)).astype(bf16)
    x_m_p = _embed((n_m_p, F_PAD), (0, H_GRP, x_m_raw)).astype(bf16)

    # Combined dense adjacency  A[dst, src] = edge multiplicity:
    #   [[ op<-op , op<-m ],
    #    [ m <-op , m <-m ]]            (small integer counts: exact in bf16)
    a_all = _embed(
        (n_tot_p, n_tot_p),
        (0, 0, adj["op_op"]), (0, n_op_p, adj["m_op"]),
        (n_op_p, 0, adj["op_m"]), (n_op_p, n_op_p, adj["m_m"]),
    ).astype(bf16)

    w_mt = _embed((F_PAD, F_PAD), (H_GRP, H_GRP, params["m_trans"][0])).astype(bf16)
    b_mt = _embed((1, F_PAD), (0, H_GRP, params["m_trans"][1]))
    w_opfc = _embed((F_PAD, F_PAD), (0, 0, params["op_fc"][0])).astype(bf16)
    b_opfc = _embed((1, F_PAD), (0, 0, params["op_fc"][1]))
    w_mfc = _embed((F_PAD, F_PAD), (H_GRP, 0, params["m_fc"][0])).astype(bf16)
    b_mfc = _embed((1, F_PAD), (0, 0, params["m_fc"][1]))

    packed = [_pack_layer_weights(lp) for lp in params["layers"]]
    w1_all = jnp.stack([p[0] for p in packed]).astype(bf16)   # (L, 2, 128, 128)
    b1_all = jnp.stack([p[1] for p in packed])                # (L, 2, 1, 128) f32
    w2_all = jnp.stack([p[2] for p in packed]).astype(bf16)
    b2_all = jnp.stack([p[3] for p in packed])

    inputs = (a_all, x_op_p, x_m_p, w_mt, b_mt,
              w1_all, b1_all, w2_all, b2_all,
              w_opfc, b_opfc, w_mfc, b_mfc)
    vmem_spec = pl.BlockSpec(memory_space=pltpu.MemorySpace.VMEM)

    out_op_p, out_m_p = pl.pallas_call(
        functools.partial(_gnn_fused_kernel, num_layers=num_layers, n_op_p=n_op_p),
        out_shape=(
            jax.ShapeDtypeStruct((n_op_p, F_PAD), jnp.float32),
            jax.ShapeDtypeStruct((n_m_p, F_PAD), jnp.float32),
        ),
        in_specs=[vmem_spec] * len(inputs),
        out_specs=(vmem_spec, vmem_spec),
        compiler_params=pltpu.CompilerParams(
            vmem_limit_bytes=_vmem_limit_bytes(n_op_p, n_m_p, num_layers)),
        cost_estimate=_cost_estimate(n_op_p, n_m_p, num_layers),
    )(*inputs)

    return {
        "op": out_op_p[:n_op, :hidden_dim],
        "m": out_m_p[:n_m, :hidden_dim],
    }


# --------------------------- pure-JAX reference ----------------------------

def gnn_reference(params, x_op, x_m_raw, adj):
    x_m = x_m_raw @ params["m_trans"][0] + params["m_trans"][1][0]
    xo = x_op

    def mlp(h, p):
        w1, b1, w2, b2 = p
        return jnp.maximum(h @ w1 + b1[0], 0.0) @ w2 + b2[0]

    for lp in params["layers"]:
        s_op = mlp(adj["op_op"] @ xo, lp["nn1"]) + mlp(adj["m_op"] @ x_m, lp["nn3"])
        s_m = mlp(adj["op_m"] @ xo, lp["nn2"]) + mlp(adj["m_m"] @ x_m, lp["nn4"])
        xo = jnp.where(s_op > 0, s_op, 0.01 * s_op)
        x_m = jnp.where(s_m > 0, s_m, 0.01 * s_m)
    return {"op": xo @ params["op_fc"][0] + params["op_fc"][1][0],
            "m": x_m @ params["m_fc"][0] + params["m_fc"][1][0]}


# ----------------------------- parameter setup -----------------------------

def _init_linear(key, d_in, d_out):
    kw, kb = jax.random.split(key)
    scale = 1.0 / jnp.sqrt(jnp.float32(d_in))
    w = jax.random.uniform(kw, (d_in, d_out), jnp.float32, -scale, scale)
    b = jax.random.uniform(kb, (1, d_out), jnp.float32, -scale, scale)
    return w, b


def _init_mlp(key, d_in, hidden):
    k1, k2 = jax.random.split(key)
    w1, b1 = _init_linear(k1, d_in, hidden)
    w2, b2 = _init_linear(k2, hidden, hidden)
    return (w1, b1, w2, b2)


def init_gnn_params(key, num_layers, hidden_dim, delete_node=False):
    in_dim = 5 if delete_node else 7
    keys = jax.random.split(key, 3 + num_layers)
    params = {
        "m_trans": _init_linear(keys[0], 4, in_dim),
        "op_fc": _init_linear(keys[1], hidden_dim, hidden_dim),
        "m_fc": _init_linear(keys[2], hidden_dim, hidden_dim),
        "layers": [],
    }
    d = in_dim
    for li in range(num_layers):
        lk = jax.random.split(keys[3 + li], 4)
        params["layers"].append({
            "nn1": _init_mlp(lk[0], d, hidden_dim),  # op -> op
            "nn2": _init_mlp(lk[1], d, hidden_dim),  # op -> m
            "nn3": _init_mlp(lk[2], d, hidden_dim),  # m  -> op
            "nn4": _init_mlp(lk[3], d, hidden_dim),  # m  -> m
        })
        d = hidden_dim
    return params


def build_adjacency(edge_index, n_src, n_dst):
    # A[dst, src] = number of edges src -> dst  (dense scatter-add operator)
    src, dst = edge_index[0], edge_index[1]
    a = jnp.zeros((n_dst, n_src), jnp.float32)
    return a.at[dst, src].add(1.0)


# ----------------------------------- main -----------------------------------

if __name__ == "__main__":
    key = jax.random.PRNGKey(0)
    k_param, k_xop, k_xm, k_e1, k_e2, k_e3, k_e4 = jax.random.split(key, 7)

    NUM_LAYERS = 2
    HIDDEN_DIM = 32
    N_OP, N_M = 32, 16
    E = 64  # edges per edge type

    params = init_gnn_params(k_param, NUM_LAYERS, HIDDEN_DIM, delete_node=False)

    # node features: op nodes already 7-dim, m nodes raw 4-dim
    x_op = jax.random.normal(k_xop, (N_OP, 7), jnp.float32)
    x_m = jax.random.normal(k_xm, (N_M, 4), jnp.float32)

    def rand_edges(k, n_src, n_dst):
        ks, kd = jax.random.split(k)
        return jnp.stack([
            jax.random.randint(ks, (E,), 0, n_src),
            jax.random.randint(kd, (E,), 0, n_dst),
        ])

    ei_op_op = rand_edges(k_e1, N_OP, N_OP)
    ei_op_m = rand_edges(k_e2, N_OP, N_M)
    ei_m_op = rand_edges(k_e3, N_M, N_OP)
    ei_m_m = rand_edges(k_e4, N_M, N_M)

    adj = {
        "op_op": build_adjacency(ei_op_op, N_OP, N_OP),
        "op_m": build_adjacency(ei_op_m, N_OP, N_M),
        "m_op": build_adjacency(ei_m_op, N_M, N_OP),
        "m_m": build_adjacency(ei_m_m, N_M, N_M),
    }

    fwd = jax.jit(functools.partial(gnn_forward, hidden_dim=HIDDEN_DIM))
    out = fwd(params, x_op, x_m, adj)
    jax.block_until_ready(out)

    assert out["op"].shape == (N_OP, HIDDEN_DIM)
    assert out["m"].shape == (N_M, HIDDEN_DIM)
    assert bool(jnp.all(jnp.isfinite(out["op"]))) and bool(jnp.all(jnp.isfinite(out["m"])))

    # Structural correctness check vs f32 reference (loose: bf16 matmul operands).
    ref = gnn_reference(params, x_op, x_m, adj)
    for k in ("op", "m"):
        denom = float(jnp.max(jnp.abs(ref[k]))) + 1e-6
        rel_err = float(jnp.max(jnp.abs(out[k] - ref[k]))) / denom
        assert rel_err < 8e-2, f"{k}: relative max error {rel_err}"

    print("KERNEL_OK")
</pallas_src>

<mosaic_0001>
module attributes {stable_mosaic.version = 11 : i64} {
  func.func @_gnn_fused_kernel(%arg0: memref<48x48xbf16, #tpu.memory_space<vmem>>, %arg1: memref<32x128xbf16, #tpu.memory_space<vmem>>, %arg2: memref<16x128xbf16, #tpu.memory_space<vmem>>, %arg3: memref<128x128xbf16, #tpu.memory_space<vmem>>, %arg4: memref<1x128xf32, #tpu.memory_space<vmem>>, %arg5: memref<2x2x128x128xbf16, #tpu.memory_space<vmem>>, %arg6: memref<2x2x1x128xf32, #tpu.memory_space<vmem>>, %arg7: memref<2x2x128x128xbf16, #tpu.memory_space<vmem>>, %arg8: memref<2x2x1x128xf32, #tpu.memory_space<vmem>>, %arg9: memref<128x128xbf16, #tpu.memory_space<vmem>>, %arg10: memref<1x128xf32, #tpu.memory_space<vmem>>, %arg11: memref<128x128xbf16, #tpu.memory_space<vmem>>, %arg12: memref<1x128xf32, #tpu.memory_space<vmem>>, %arg13: memref<32x128xf32, #tpu.memory_space<vmem>>, %arg14: memref<16x128xf32, #tpu.memory_space<vmem>>) attributes {dimension_semantics = [], scalar_prefetch = 0 : i64, scratch_operands = 0 : i64, tpu.core_type = #tpu.core_type<tc>} {
    %c0 = arith.constant 0 : index
    %c0_0 = arith.constant 0 : index
    %0 = vector.load %arg2[%c0, %c0_0] : memref<16x128xbf16, #tpu.memory_space<vmem>>, vector<16x128xbf16>
    %c0_1 = arith.constant 0 : index
    %c0_2 = arith.constant 0 : index
    %1 = vector.load %arg3[%c0_1, %c0_2] : memref<128x128xbf16, #tpu.memory_space<vmem>>, vector<128x128xbf16>
    %cst = arith.constant dense<0.000000e+00> : vector<16x128xf32>
    %2 = tpu.matmul %0, %1, %cst {dimension_numbers = #tpu.dot_dimension_numbers<[1], [0], [0], [1], [0, 0, 1, 1], [], []>} : vector<16x128xbf16>, vector<128x128xbf16>, vector<16x128xf32> -> vector<16x128xf32>
    %c0_3 = arith.constant 0 : index
    %c0_4 = arith.constant 0 : index
    %3 = vector.load %arg4[%c0_3, %c0_4] : memref<1x128xf32, #tpu.memory_space<vmem>>, vector<1x128xf32>
    %4 = vector.broadcast %3 : vector<1x128xf32> to vector<16x128xf32>
    %5 = arith.addf %2, %4 : vector<16x128xf32>
    %6 = arith.truncf %5 : vector<16x128xf32> to vector<16x128xbf16>
    %c0_5 = arith.constant 0 : index
    %c0_6 = arith.constant 0 : index
    %7 = vector.load %arg1[%c0_5, %c0_6] : memref<32x128xbf16, #tpu.memory_space<vmem>>, vector<32x128xbf16>
    %8 = tpu.concatenate %7, %6 in 0 : vector<32x128xbf16>, vector<16x128xbf16> -> vector<48x128xbf16>
    %c0_7 = arith.constant 0 : index
    %c0_8 = arith.constant 0 : index
    %9 = vector.load %arg0[%c0_7, %c0_8] : memref<48x48xbf16, #tpu.memory_space<vmem>>, vector<48x48xbf16>
    %cst_9 = arith.constant dense<0.000000e+00> : vector<48x128xf32>
    %10 = tpu.matmul %9, %8, %cst_9 {dimension_numbers = #tpu.dot_dimension_numbers<[1], [0], [0], [1], [0, 0, 1, 1], [], []>} : vector<48x48xbf16>, vector<48x128xbf16>, vector<48x128xf32> -> vector<48x128xf32>
    %11 = vector.extract_strided_slice %10 {offsets = [0, 0], sizes = [32, 128], strides = [1, 1]} : vector<48x128xf32> to vector<32x128xf32>
    %12 = arith.truncf %11 : vector<32x128xf32> to vector<32x128xbf16>
    %13 = vector.extract_strided_slice %10 {offsets = [32, 0], sizes = [16, 128], strides = [1, 1]} : vector<48x128xf32> to vector<16x128xf32>
    %14 = arith.truncf %13 : vector<16x128xf32> to vector<16x128xbf16>
    %c0_10 = arith.constant 0 : index
    %c0_11 = arith.constant 0 : index
    %c0_12 = arith.constant 0 : index
    %c0_13 = arith.constant 0 : index
    %15 = vector.load %arg5[%c0_10, %c0_11, %c0_12, %c0_13] : memref<2x2x128x128xbf16, #tpu.memory_space<vmem>>, vector<1x1x128x128xbf16>
    %16 = vector.shape_cast %15 : vector<1x1x128x128xbf16> to vector<128x128xbf16>
    %cst_14 = arith.constant dense<0.000000e+00> : vector<32x128xf32>
    %17 = tpu.matmul %12, %16, %cst_14 {dimension_numbers = #tpu.dot_dimension_numbers<[1], [0], [0], [1], [0, 0, 1, 1], [], []>} : vector<32x128xbf16>, vector<128x128xbf16>, vector<32x128xf32> -> vector<32x128xf32>
    %c0_15 = arith.constant 0 : index
    %c0_16 = arith.constant 0 : index
    %c0_17 = arith.constant 0 : index
    %c0_18 = arith.constant 0 : index
    %18 = vector.load %arg6[%c0_15, %c0_16, %c0_17, %c0_18] : memref<2x2x1x128xf32, #tpu.memory_space<vmem>>, vector<1x1x1x128xf32>
    %19 = vector.shape_cast %18 : vector<1x1x1x128xf32> to vector<1x128xf32>
    %20 = vector.broadcast %19 : vector<1x128xf32> to vector<32x128xf32>
    %21 = arith.addf %17, %20 : vector<32x128xf32>
    %cst_19 = arith.constant 0.000000e+00 : f32
    %22 = vector.broadcast %cst_19 : f32 to vector<32x128xf32>
    %23 = arith.maximumf %21, %22 : vector<32x128xf32>
    %24 = arith.truncf %23 : vector<32x128xf32> to vector<32x128xbf16>
    %c0_20 = arith.constant 0 : index
    %c0_21 = arith.constant 0 : index
    %c0_22 = arith.constant 0 : index
    %c0_23 = arith.constant 0 : index
    %25 = vector.load %arg7[%c0_20, %c0_21, %c0_22, %c0_23] : memref<2x2x128x128xbf16, #tpu.memory_space<vmem>>, vector<1x1x128x128xbf16>
    %26 = vector.shape_cast %25 : vector<1x1x128x128xbf16> to vector<128x128xbf16>
    %cst_24 = arith.constant dense<0.000000e+00> : vector<32x128xf32>
    %27 = tpu.matmul %24, %26, %cst_24 {dimension_numbers = #tpu.dot_dimension_numbers<[1], [0], [0], [1], [0, 0, 1, 1], [], []>} : vector<32x128xbf16>, vector<128x128xbf16>, vector<32x128xf32> -> vector<32x128xf32>
    %c0_25 = arith.constant 0 : index
    %c0_26 = arith.constant 0 : index
    %c0_27 = arith.constant 0 : index
    %c0_28 = arith.constant 0 : index
    %28 = vector.load %arg8[%c0_25, %c0_26, %c0_27, %c0_28] : memref<2x2x1x128xf32, #tpu.memory_space<vmem>>, vector<1x1x1x128xf32>
    %29 = vector.shape_cast %28 : vector<1x1x1x128xf32> to vector<1x128xf32>
    %30 = vector.broadcast %29 : vector<1x128xf32> to vector<32x128xf32>
    %31 = arith.addf %27, %30 : vector<32x128xf32>
    %c0_29 = arith.constant 0 : index
    %c1 = arith.constant 1 : index
    %c0_30 = arith.constant 0 : index
    %c0_31 = arith.constant 0 : index
    %32 = vector.load %arg5[%c0_29, %c1, %c0_30, %c0_31] : memref<2x2x128x128xbf16, #tpu.memory_space<vmem>>, vector<1x1x128x128xbf16>
    %33 = vector.shape_cast %32 : vector<1x1x128x128xbf16> to vector<128x128xbf16>
    %cst_32 = arith.constant dense<0.000000e+00> : vector<16x128xf32>
    %34 = tpu.matmul %14, %33, %cst_32 {dimension_numbers = #tpu.dot_dimension_numbers<[1], [0], [0], [1], [0, 0, 1, 1], [], []>} : vector<16x128xbf16>, vector<128x128xbf16>, vector<16x128xf32> -> vector<16x128xf32>
    %c0_33 = arith.constant 0 : index
    %c1_34 = arith.constant 1 : index
    %c0_35 = arith.constant 0 : index
    %c0_36 = arith.constant 0 : index
    %35 = vector.load %arg6[%c0_33, %c1_34, %c0_35, %c0_36] : memref<2x2x1x128xf32, #tpu.memory_space<vmem>>, vector<1x1x1x128xf32>
    %36 = vector.shape_cast %35 : vector<1x1x1x128xf32> to vector<1x128xf32>
    %37 = vector.broadcast %36 : vector<1x128xf32> to vector<16x128xf32>
    %38 = arith.addf %34, %37 : vector<16x128xf32>
    %cst_37 = arith.constant 0.000000e+00 : f32
    %39 = vector.broadcast %cst_37 : f32 to vector<16x128xf32>
    %40 = arith.maximumf %38, %39 : vector<16x128xf32>
    %41 = arith.truncf %40 : vector<16x128xf32> to vector<16x128xbf16>
    %c0_38 = arith.constant 0 : index
    %c1_39 = arith.constant 1 : index
    %c0_40 = arith.constant 0 : index
    %c0_41 = arith.constant 0 : index
    %42 = vector.load %arg7[%c0_38, %c1_39, %c0_40, %c0_41] : memref<2x2x128x128xbf16, #tpu.memory_space<vmem>>, vector<1x1x128x128xbf16>
    %43 = vector.shape_cast %42 : vector<1x1x128x128xbf16> to vector<128x128xbf16>
    %cst_42 = arith.constant dense<0.000000e+00> : vector<16x128xf32>
    %44 = tpu.matmul %41, %43, %cst_42 {dimension_numbers = #tpu.dot_dimension_numbers<[1], [0], [0], [1], [0, 0, 1, 1], [], []>} : vector<16x128xbf16>, vector<128x128xbf16>, vector<16x128xf32> -> vector<16x128xf32>
    %c0_43 = arith.constant 0 : index
    %c1_44 = arith.constant 1 : index
    %c0_45 = arith.constant 0 : index
    %c0_46 = arith.constant 0 : index
    %45 = vector.load %arg8[%c0_43, %c1_44, %c0_45, %c0_46] : memref<2x2x1x128xf32, #tpu.memory_space<vmem>>, vector<1x1x1x128xf32>
    %46 = vector.shape_cast %45 : vector<1x1x1x128xf32> to vector<1x128xf32>
    %47 = vector.broadcast %46 : vector<1x128xf32> to vector<16x128xf32>
    %48 = arith.addf %44, %47 : vector<16x128xf32>
    %cst_47 = arith.constant 0.000000e+00 : f32
    %49 = vector.broadcast %cst_47 : f32 to vector<32x128xf32>
    %50 = arith.cmpf ogt, %31, %49 : vector<32x128xf32>
    %cst_48 = arith.constant 0.00999999977 : f32
    %51 = vector.broadcast %cst_48 : f32 to vector<32x128xf32>
    %52 = arith.mulf %51, %31 : vector<32x128xf32>
    %53 = arith.select %50, %31, %52 : vector<32x128xi1>, vector<32x128xf32>
    %54 = arith.truncf %53 : vector<32x128xf32> to vector<32x128xbf16>
    %cst_49 = arith.constant 0.000000e+00 : f32
    %55 = vector.broadcast %cst_49 : f32 to vector<16x128xf32>
    %56 = arith.cmpf ogt, %48, %55 : vector<16x128xf32>
    %cst_50 = arith.constant 0.00999999977 : f32
    %57 = vector.broadcast %cst_50 : f32 to vector<16x128xf32>
    %58 = arith.mulf %57, %48 : vector<16x128xf32>
    %59 = arith.select %56, %48, %58 : vector<16x128xi1>, vector<16x128xf32>
    %60 = arith.truncf %59 : vector<16x128xf32> to vector<16x128xbf16>
    %61 = tpu.concatenate %54, %60 in 0 : vector<32x128xbf16>, vector<16x128xbf16> -> vector<48x128xbf16>
    %cst_51 = arith.constant dense<0.000000e+00> : vector<48x128xf32>
    %62 = tpu.matmul %9, %61, %cst_51 {dimension_numbers = #tpu.dot_dimension_numbers<[1], [0], [0], [1], [0, 0, 1, 1], [], []>} : vector<48x48xbf16>, vector<48x128xbf16>, vector<48x128xf32> -> vector<48x128xf32>
    %63 = vector.extract_strided_slice %62 {offsets = [0, 0], sizes = [32, 128], strides = [1, 1]} : vector<48x128xf32> to vector<32x128xf32>
    %64 = arith.truncf %63 : vector<32x128xf32> to vector<32x128xbf16>
    %65 = vector.extract_strided_slice %62 {offsets = [32, 0], sizes = [16, 128], strides = [1, 1]} : vector<48x128xf32> to vector<16x128xf32>
    %66 = arith.truncf %65 : vector<16x128xf32> to vector<16x128xbf16>
    %c1_52 = arith.constant 1 : index
    %c0_53 = arith.constant 0 : index
    %c0_54 = arith.constant 0 : index
    %c0_55 = arith.constant 0 : index
    %67 = vector.load %arg5[%c1_52, %c0_53, %c0_54, %c0_55] : memref<2x2x128x128xbf16, #tpu.memory_space<vmem>>, vector<1x1x128x128xbf16>
    %68 = vector.shape_cast %67 : vector<1x1x128x128xbf16> to vector<128x128xbf16>
    %cst_56 = arith.constant dense<0.000000e+00> : vector<32x128xf32>
    %69 = tpu.matmul %64, %68, %cst_56 {dimension_numbers = #tpu.dot_dimension_numbers<[1], [0], [0], [1], [0, 0, 1, 1], [], []>} : vector<32x128xbf16>, vector<128x128xbf16>, vector<32x128xf32> -> vector<32x128xf32>
    %c1_57 = arith.constant 1 : index
    %c0_58 = arith.constant 0 : index
    %c0_59 = arith.constant 0 : index
    %c0_60 = arith.constant 0 : index
    %70 = vector.load %arg6[%c1_57, %c0_58, %c0_59, %c0_60] : memref<2x2x1x128xf32, #tpu.memory_space<vmem>>, vector<1x1x1x128xf32>
    %71 = vector.shape_cast %70 : vector<1x1x1x128xf32> to vector<1x128xf32>
    %72 = vector.broadcast %71 : vector<1x128xf32> to vector<32x128xf32>
    %73 = arith.addf %69, %72 : vector<32x128xf32>
    %cst_61 = arith.constant 0.000000e+00 : f32
    %74 = vector.broadcast %cst_61 : f32 to vector<32x128xf32>
    %75 = arith.maximumf %73, %74 : vector<32x128xf32>
    %76 = arith.truncf %75 : vector<32x128xf32> to vector<32x128xbf16>
    %c1_62 = arith.constant 1 : index
    %c0_63 = arith.constant 0 : index
    %c0_64 = arith.constant 0 : index
    %c0_65 = arith.constant 0 : index
    %77 = vector.load %arg7[%c1_62, %c0_63, %c0_64, %c0_65] : memref<2x2x128x128xbf16, #tpu.memory_space<vmem>>, vector<1x1x128x128xbf16>
    %78 = vector.shape_cast %77 : vector<1x1x128x128xbf16> to vector<128x128xbf16>
    %cst_66 = arith.constant dense<0.000000e+00> : vector<32x128xf32>
    %79 = tpu.matmul %76, %78, %cst_66 {dimension_numbers = #tpu.dot_dimension_numbers<[1], [0], [0], [1], [0, 0, 1, 1], [], []>} : vector<32x128xbf16>, vector<128x128xbf16>, vector<32x128xf32> -> vector<32x128xf32>
    %c1_67 = arith.constant 1 : index
    %c0_68 = arith.constant 0 : index
    %c0_69 = arith.constant 0 : index
    %c0_70 = arith.constant 0 : index
    %80 = vector.load %arg8[%c1_67, %c0_68, %c0_69, %c0_70] : memref<2x2x1x128xf32, #tpu.memory_space<vmem>>, vector<1x1x1x128xf32>
    %81 = vector.shape_cast %80 : vector<1x1x1x128xf32> to vector<1x128xf32>
    %82 = vector.broadcast %81 : vector<1x128xf32> to vector<32x128xf32>
    %83 = arith.addf %79, %82 : vector<32x128xf32>
    %c1_71 = arith.constant 1 : index
    %c1_72 = arith.constant 1 : index
    %c0_73 = arith.constant 0 : index
    %c0_74 = arith.constant 0 : index
    %84 = vector.load %arg5[%c1_71, %c1_72, %c0_73, %c0_74] : memref<2x2x128x128xbf16, #tpu.memory_space<vmem>>, vector<1x1x128x128xbf16>
    %85 = vector.shape_cast %84 : vector<1x1x128x128xbf16> to vector<128x128xbf16>
    %cst_75 = arith.constant dense<0.000000e+00> : vector<16x128xf32>
    %86 = tpu.matmul %66, %85, %cst_75 {dimension_numbers = #tpu.dot_dimension_numbers<[1], [0], [0], [1], [0, 0, 1, 1], [], []>} : vector<16x128xbf16>, vector<128x128xbf16>, vector<16x128xf32> -> vector<16x128xf32>
    %c1_76 = arith.constant 1 : index
    %c1_77 = arith.constant 1 : index
    %c0_78 = arith.constant 0 : index
    %c0_79 = arith.constant 0 : index
    %87 = vector.load %arg6[%c1_76, %c1_77, %c0_78, %c0_79] : memref<2x2x1x128xf32, #tpu.memory_space<vmem>>, vector<1x1x1x128xf32>
    %88 = vector.shape_cast %87 : vector<1x1x1x128xf32> to vector<1x128xf32>
    %89 = vector.broadcast %88 : vector<1x128xf32> to vector<16x128xf32>
    %90 = arith.addf %86, %89 : vector<16x128xf32>
    %cst_80 = arith.constant 0.000000e+00 : f32
    %91 = vector.broadcast %cst_80 : f32 to vector<16x128xf32>
    %92 = arith.maximumf %90, %91 : vector<16x128xf32>
    %93 = arith.truncf %92 : vector<16x128xf32> to vector<16x128xbf16>
    %c1_81 = arith.constant 1 : index
    %c1_82 = arith.constant 1 : index
    %c0_83 = arith.constant 0 : index
    %c0_84 = arith.constant 0 : index
    %94 = vector.load %arg7[%c1_81, %c1_82, %c0_83, %c0_84] : memref<2x2x128x128xbf16, #tpu.memory_space<vmem>>, vector<1x1x128x128xbf16>
    %95 = vector.shape_cast %94 : vector<1x1x128x128xbf16> to vector<128x128xbf16>
    %cst_85 = arith.constant dense<0.000000e+00> : vector<16x128xf32>
    %96 = tpu.matmul %93, %95, %cst_85 {dimension_numbers = #tpu.dot_dimension_numbers<[1], [0], [0], [1], [0, 0, 1, 1], [], []>} : vector<16x128xbf16>, vector<128x128xbf16>, vector<16x128xf32> -> vector<16x128xf32>
    %c1_86 = arith.constant 1 : index
    %c1_87 = arith.constant 1 : index
    %c0_88 = arith.constant 0 : index
    %c0_89 = arith.constant 0 : index
    %97 = vector.load %arg8[%c1_86, %c1_87, %c0_88, %c0_89] : memref<2x2x1x128xf32, #tpu.memory_space<vmem>>, vector<1x1x1x128xf32>
    %98 = vector.shape_cast %97 : vector<1x1x1x128xf32> to vector<1x128xf32>
    %99 = vector.broadcast %98 : vector<1x128xf32> to vector<16x128xf32>
    %100 = arith.addf %96, %99 : vector<16x128xf32>
    %cst_90 = arith.constant 0.000000e+00 : f32
    %101 = vector.broadcast %cst_90 : f32 to vector<32x128xf32>
    %102 = arith.cmpf ogt, %83, %101 : vector<32x128xf32>
    %cst_91 = arith.constant 0.00999999977 : f32
    %103 = vector.broadcast %cst_91 : f32 to vector<32x128xf32>
    %104 = arith.mulf %103, %83 : vector<32x128xf32>
    %105 = arith.select %102, %83, %104 : vector<32x128xi1>, vector<32x128xf32>
    %106 = arith.truncf %105 : vector<32x128xf32> to vector<32x128xbf16>
    %cst_92 = arith.constant 0.000000e+00 : f32
    %107 = vector.broadcast %cst_92 : f32 to vector<16x128xf32>
    %108 = arith.cmpf ogt, %100, %107 : vector<16x128xf32>
    %cst_93 = arith.constant 0.00999999977 : f32
    %109 = vector.broadcast %cst_93 : f32 to vector<16x128xf32>
    %110 = arith.mulf %109, %100 : vector<16x128xf32>
    %111 = arith.select %108, %100, %110 : vector<16x128xi1>, vector<16x128xf32>
    %112 = arith.truncf %111 : vector<16x128xf32> to vector<16x128xbf16>
    %113 = tpu.concatenate %106, %112 in 0 : vector<32x128xbf16>, vector<16x128xbf16> -> vector<48x128xbf16>
    %114 = vector.extract_strided_slice %113 {offsets = [0, 0], sizes = [32, 128], strides = [1, 1]} : vector<48x128xbf16> to vector<32x128xbf16>
    %c0_94 = arith.constant 0 : index
    %c0_95 = arith.constant 0 : index
    %115 = vector.load %arg9[%c0_94, %c0_95] : memref<128x128xbf16, #tpu.memory_space<vmem>>, vector<128x128xbf16>
    %cst_96 = arith.constant dense<0.000000e+00> : vector<32x128xf32>
    %116 = tpu.matmul %114, %115, %cst_96 {dimension_numbers = #tpu.dot_dimension_numbers<[1], [0], [0], [1], [0, 0, 1, 1], [], []>} : vector<32x128xbf16>, vector<128x128xbf16>, vector<32x128xf32> -> vector<32x128xf32>
    %c0_97 = arith.constant 0 : index
    %c0_98 = arith.constant 0 : index
    %117 = vector.load %arg10[%c0_97, %c0_98] : memref<1x128xf32, #tpu.memory_space<vmem>>, vector<1x128xf32>
    %118 = vector.broadcast %117 : vector<1x128xf32> to vector<32x128xf32>
    %119 = arith.addf %116, %118 : vector<32x128xf32>
    %c0_99 = arith.constant 0 : index
    %c0_100 = arith.constant 0 : index
    %120 = vector.load %arg13[%c0_99, %c0_100] : memref<32x128xf32, #tpu.memory_space<vmem>>, vector<32x128xf32>
    tpu.vector_store %arg13[%c0_99, %c0_100], %119 {strides = array<i32>} : memref<32x128xf32, #tpu.memory_space<vmem>>, vector<32x128xf32>,
    %121 = vector.extract_strided_slice %113 {offsets = [32, 0], sizes = [16, 128], strides = [1, 1]} : vector<48x128xbf16> to vector<16x128xbf16>
    %c0_101 = arith.constant 0 : index
    %c0_102 = arith.constant 0 : index
    %122 = vector.load %arg11[%c0_101, %c0_102] : memref<128x128xbf16, #tpu.memory_space<vmem>>, vector<128x128xbf16>
    %cst_103 = arith.constant dense<0.000000e+00> : vector<16x128xf32>
    %123 = tpu.matmul %121, %122, %cst_103 {dimension_numbers = #tpu.dot_dimension_numbers<[1], [0], [0], [1], [0, 0, 1, 1], [], []>} : vector<16x128xbf16>, vector<128x128xbf16>, vector<16x128xf32> -> vector<16x128xf32>
    %c0_104 = arith.constant 0 : index
    %c0_105 = arith.constant 0 : index
    %124 = vector.load %arg12[%c0_104, %c0_105] : memref<1x128xf32, #tpu.memory_space<vmem>>, vector<1x128xf32>
    %125 = vector.broadcast %124 : vector<1x128xf32> to vector<16x128xf32>
    %126 = arith.addf %123, %125 : vector<16x128xf32>
    %c0_106 = arith.constant 0 : index
    %c0_107 = arith.constant 0 : index
    %127 = vector.load %arg14[%c0_106, %c0_107] : memref<16x128xf32, #tpu.memory_space<vmem>>, vector<16x128xf32>
    tpu.vector_store %arg14[%c0_106, %c0_107], %126 {strides = array<i32>} : memref<16x128xf32, #tpu.memory_space<vmem>>, vector<16x128xf32>,
    return
  }
}

</mosaic_0001>

<bundles_post_ra>
// kernel: gnn_forward.1
= control target key start
LH: loop header
LB: loop body
LE: loop exit
PB: predicated region body
PF: predicated region fallthrough
CT: control target
= control target key end

     0   :  { %20 = vsyncpa [#allocation3], 0  ;;  %v2340_v1 = vmov 0.0   ;;  %vm2341_vm0 = vmmov 0   ;;  %s2862_s0 = inlined_call_operand.vmem [shape: bf16[48,48], index: 0, kind: input, shape index: {}]   ;;  %s2863_s1 = inlined_call_operand.vmem [shape: bf16[32,128], index: 1, kind: input, shape index: {}]   ;;  %s2864_s2 = inlined_call_operand.vmem [shape: bf16[16,128], index: 2, kind: input, shape index: {}]   ;;  %s2865_s3 = inlined_call_operand.vmem [shape: bf16[128,128], index: 3, kind: input, shape index: {}]   ;;  %s2866_s4 = inlined_call_operand.vmem [shape: f32[1,128], index: 4, kind: input, shape index: {}]   ;;  %s2867_s5 = inlined_call_operand.vmem [shape: bf16[2,2,128,128], index: 5, kind: input, shape index: {}]   ;;  %s2868_s6 = inlined_call_operand.vmem [shape: f32[2,2,1,128], index: 6, kind: input, shape index: {}]   ;;  %s2869_s7 = inlined_call_operand.vmem [shape: bf16[2,2,128,128], index: 7, kind: input, shape index: {}]   ;;  %s2870_s8 = inlined_call_operand.vmem [shape: f32[2,2,1,128], index: 8, kind: input, shape index: {}]   ;;  %s2871_s9 = inlined_call_operand.vmem [shape: bf16[128,128], index: 9, kind: input, shape index: {}]   ;;  %s2872_s10 = inlined_call_operand.vmem [shape: f32[1,128], index: 10, kind: input, shape index: {}]   ;;  %s2873_s11 = inlined_call_operand.vmem [shape: bf16[128,128], index: 11, kind: input, shape index: {}]   ;;  %s2874_s12 = inlined_call_operand.vmem [shape: f32[1,128], index: 12, kind: input, shape index: {}]   ;;  %s2875_s13 = inlined_call_operand.hbm [shape: f32[32,128], index: 13, kind: output, shape index: {0}]   ;;  %s2876_s14 = inlined_call_operand.hbm [shape: f32[16,128], index: 14, kind: output, shape index: {1}]  }
   0x1   :  { %v2198_v0 = vld [vmem:[%s2865_s3] sm:$0xff]   ;;  %1936 = vmatprep.subr.bf16.mxu0 %v2340_v1  ;;  %1956 = vmatprep.subr.bf16.mxu1 %v2340_v1  ;;  %v2199_v2 = vld [vmem:[%s2865_s3 + $0x8] sm:$0xff]   ;;  %v2200_v3 = vld [vmem:[%s2865_s3 + $0x10] sm:$0xff]  }
   0x2   :  { %1937 = vmatpush3.bf16.msra.mxu0 %v2198_v0  ;;  %1952 = vmatprep.mubr.msk.bf16.mxu0 %vm2341_vm0, %v2340_v1  ;;  %v2207_v4 = vld [vmem:[%s2863_s1] sm:$0xff]   ;;  %v2201_v5 = vld [vmem:[%s2865_s3 + $0x18] sm:$0xff]   ;;  %v2203_v7 = vld [vmem:[%s2865_s3 + $0x28] sm:$0xff]  }
   0x3   :  { %1938 = vmatprep.subr.bf16.mxu0 %v2340_v1  ;;  %1962 = vmatprep.mubr.msk.bf16.mxu1 %vm2341_vm0, %v2340_v1  ;;  %v2202_v6 = vld [vmem:[%s2865_s3 + $0x20] sm:$0xff]   ;;  %v2204_v8 = vld [vmem:[%s2865_s3 + $0x30] sm:$0xff]   ;;  %v2205_v9 = vld [vmem:[%s2865_s3 + $0x38] sm:$0xff]  }
   0x4   :  { %1957 = vmatpush3.bf16.msra.mxu1 %v2207_v4  ;;  %v2206_v10 = vld [vmem:[%s2864_s2] sm:$0xff]  }
   0x5   :  { %1958 = vmatprep.subr.bf16.mxu1 %v2340_v1 }
   0x6   :  { %1939 = vmatpush3.bf16.msra.mxu0 %v2199_v2 }
   0x7   :  { %1940 = vmatprep.subr.bf16.mxu0 %v2340_v1 }
   0xa   :  { %1941 = vmatpush3.bf16.msra.mxu0 %v2200_v3 }
   0xb   :  { %1942 = vmatprep.subr.bf16.mxu0 %v2340_v1 }
   0xe   :  { %1943 = vmatpush3.bf16.msra.mxu0 %v2201_v5 }
   0xf   :  { %1944 = vmatprep.subr.bf16.mxu0 %v2340_v1 }
  0x12   :  { %1945 = vmatpush3.bf16.msra.mxu0 %v2202_v6 }
  0x13   :  { %1946 = vmatprep.subr.bf16.mxu0 %v2340_v1 }
  0x16   :  { %1947 = vmatpush3.bf16.msra.mxu0 %v2203_v7 }
  0x17   :  { %1948 = vmatprep.subr.bf16.mxu0 %v2340_v1 }
  0x1a   :  { %1949 = vmatpush3.bf16.msra.mxu0 %v2204_v8 }
  0x1b   :  { %1950 = vmatprep.subr.bf16.mxu0 %v2340_v1 }
  0x1e   :  { %1951 = vmatpush3.bf16.msra.mxu0 %v2205_v9 }
  0x21   :  { %1953 = vmatmul.mubr.bf16.vlgmr.msra.gmra.mrb[0].mxu0 %v2206_v10 }
  0x22   :  { %21 = vsyncpa [#allocation5], 0  ;;  %v2208_v11 = vld [vmem:[%s2863_s1 + $0x8] sm:$0xff]   ;;  %v1607_v12 = vld [vmem:[%s2866_s4] ss:$0 sm:$0xff]  ;;  %vm207_vm1 = vcmask 392192  }
  0x23   :  { %1959 = vmatpush3.bf16.msra.mxu1 %v2208_v11  ;;  %v2212_v19 = vld [vmem:[%s2867_s5] sm:$0xff]   ;;  %v2213_v22 = vld [vmem:[%s2867_s5 + $0x8] sm:$0xff]   ;;  %v2214_v23 = vld [vmem:[%s2867_s5 + $0x10] sm:$0xff]  }
  0x24   :  { %1960 = vmatprep.subr.bf16.mxu1 %v2340_v1  ;;  %v2478_v21 = vld [vmem:[%s2862_s0] sm:$0xff]   ;;  %v2493_v24 = vld [vmem:[%s2862_s0 + $0x8] sm:$0xff]   ;;  %v2215_v25 = vld [vmem:[%s2867_s5 + $0x18] sm:$0xff]  }
  0x25   :  { %v2216_v26 = vld [vmem:[%s2867_s5 + $0x20] sm:$0xff]   ;;  %v2508_v27 = vld [vmem:[%s2862_s0 + $0x10] sm:$0xff]   ;;  %v2217_v28 = vld [vmem:[%s2867_s5 + $0x28] sm:$0xff]  }
  0x26   :  { %v2218_v29 = vld [vmem:[%s2867_s5 + $0x30] sm:$0xff]   ;;  %v2219_v30 = vld [vmem:[%s2867_s5 + $0x38] sm:$0xff]   ;;  %v2228_v31 = vld [vmem:[%s2869_s7] sm:$0xff]  }
  0x27   :  { %v2229_v32 = vld [vmem:[%s2869_s7 + $0x8] sm:$0xff]   ;;  %1994 = vmatprep.subr.bf16.mxu0 %v2228_v31  ;;  %v2230_v33 = vld [vmem:[%s2869_s7 + $0x10] sm:$0xff]   ;;  %v2231_v34 = vld [vmem:[%s2869_s7 + $0x18] sm:$0xff]  }
  0x28   :  { %1995 = vmatpush3.bf16.msra.mxu0 %v2228_v31  ;;  %v2232_v35 = vld [vmem:[%s2869_s7 + $0x20] sm:$0xff]   ;;  %v2233_v36 = vld [vmem:[%s2869_s7 + $0x28] sm:$0xff]   ;;  %v2222_v51 = vld [vmem:[%s2867_s5 + $0x50] sm:$0xff]  }
  0x29   :  { %1996 = vmatprep.subr.bf16.mxu0 %v2229_v32  ;;  %v2220_v45 = vld [vmem:[%s2867_s5 + $0x40] sm:$0xff]   ;;  %v2221_v48 = vld [vmem:[%s2867_s5 + $0x48] sm:$0xff]   ;;  %v2223_v55 = vld [vmem:[%s2867_s5 + $0x58] sm:$0xff]  }
  0x2a   :  { %v2224_v56 = vld [vmem:[%s2867_s5 + $0x60] sm:$0xff]   ;;  %v2225_v57 = vld [vmem:[%s2867_s5 + $0x68] sm:$0xff]   ;;  %v2226_v58 = vld [vmem:[%s2867_s5 + $0x70] sm:$0xff]  }
  0x2b   :  { %v2227_v59 = vld [vmem:[%s2867_s5 + $0x78] sm:$0xff]   ;;  %v2234_v60 = vld [vmem:[%s2869_s7 + $0x30] sm:$0xff]   ;;  %v1625_v62 = vld [vmem:[%s2868_s6] ss:$0 sm:$0xff] }
  0x2c   :  { %1997 = vmatpush3.bf16.msra.mxu0 %v2229_v32  ;;  %v2235_v61 = vld [vmem:[%s2869_s7 + $0x38] sm:$0xff]  }
  0x2d   :  { %1998 = vmatprep.subr.bf16.mxu0 %v2230_v33  ;;  %v2243_v31 = vld [vmem:[%s2869_s7 + $0x78] sm:$0xff]  }
  0x30   :  { %1999 = vmatpush3.bf16.msra.mxu0 %v2230_v33 }
  0x31   :  { %2000 = vmatprep.subr.bf16.mxu0 %v2231_v34 }
  0x34   :  { %2001 = vmatpush3.bf16.msra.mxu0 %v2231_v34 }
  0x35   :  { %2002 = vmatprep.subr.bf16.mxu0 %v2232_v35 }
  0x38   :  { %2003 = vmatpush3.bf16.msra.mxu0 %v2232_v35  ;;  %v1634_v35 = vld [vmem:[%s2870_s8] ss:$0 sm:$0xff] }
  0x39   :  { %2004 = vmatprep.subr.bf16.mxu0 %v2233_v36 }
  0x3c   :  { %2005 = vmatpush3.bf16.msra.mxu0 %v2233_v36 }
  0x3d   :  { %2006 = vmatprep.subr.bf16.mxu0 %v2234_v60 }
  0x40   :  { %2007 = vmatpush3.bf16.msra.mxu0 %v2234_v60 }
  0x41   :  { %2008 = vmatprep.subr.bf16.mxu0 %v2235_v61 }
  0x44   :  { %2009 = vmatpush3.bf16.msra.mxu0 %v2235_v61 }
  0x45   :  { %2034 = vmatprep.subr.bf16.mxu0 %v2340_v1 }
  0xf4   :  { %v162_v13 = vpop.f32.mrb[0].mxu0 }
  0xf5   :  { %v1954_v14 = vpop.f32.mrb[1].mxu0  ;;  %v163_v16 = vadd.f32 %v1607_v12, %v162_v13 }
  0xf6   :  { %v165_v15 = vpop.f32.mrb[2].mxu0  ;;  %v2236_v14 = vld [vmem:[%s2869_s7 + $0x40] sm:$0xff]  }
  0xf7   :  { %v166_v17 = vadd.f32 %v1607_v12, %v165_v15  ;;  %v1955_v18 = vpop.f32.mrb[3].mxu0  ;;  %v2237_v15 = vld [vmem:[%s2869_s7 + $0x48] sm:$0xff]  }
  0xf8   :  { %v2240_v18 = vld [vmem:[%s2869_s7 + $0x60] sm:$0xff]  }
  0xf9   :  { %v169_v20 = vpack.c.bf16 %v166_v17, %v163_v16  ;;  %v2238_v16 = vld [vmem:[%s2869_s7 + $0x50] sm:$0xff]   ;;  %v2239_v17 = vld [vmem:[%s2869_s7 + $0x58] sm:$0xff]  }
  0xfb   :  { %1961 = vmatpush3.bf16.msra.mxu1 %v169_v20  ;;  %v1660_v20 = vld [vmem:[%s2868_s6 + $0x1] ss:$0 sm:$0xff] }
  0xfc   :  { %1974 = vmatprep.subr.bf16.mxu1 %v2212_v19 }
  0xfe   :  { %1963 = vmatmul.mubr.msk.bf16.vlgmr.msra.gmra.mrb[0].mxu1 %vm207_vm1, %v2478_v21 }
  0xff   :  { %1966 = vmatprep.mubr.msk.bf16.mxu1 %vm2341_vm0, %v2340_v1  ;;  %1975 = vmatpush3.bf16.msra.mxu1 %v2212_v19  ;;  %v2241_v19 = vld [vmem:[%s2869_s7 + $0x68] sm:$0xff]  }
 0x100   :  { %1976 = vmatprep.subr.bf16.mxu1 %v2213_v22 }
 0x103   :  { %1977 = vmatpush3.bf16.msra.mxu1 %v2213_v22 }
 0x104   :  { %1978 = vmatprep.subr.bf16.mxu1 %v2214_v23 }
 0x106   :  { %1967 = vmatmul.mubr.msk.bf16.gmra.mrb[4].mxu1 %vm207_vm1, %v2493_v24 }
 0x107   :  { %1970 = vmatprep.mubr.msk.bf16.mxu1 %vm2341_vm0, %v2340_v1  ;;  %1979 = vmatpush3.bf16.msra.mxu1 %v2214_v23  ;;  %v2242_v23 = vld [vmem:[%s2869_s7 + $0x70] sm:$0xff]  }
 0x108   :  { %1980 = vmatprep.subr.bf16.mxu1 %v2215_v25 }
 0x10b   :  { %1981 = vmatpush3.bf16.msra.mxu1 %v2215_v25 }
 0x10c   :  { %1982 = vmatprep.subr.bf16.mxu1 %v2216_v26 }
 0x10e   :  { %1971 = vmatmul.mubr.msk.bf16.gmra.mrb[8].mxu1 %vm207_vm1, %v2508_v27 }
 0x10f   :  { %1983 = vmatpush3.bf16.msra.mxu1 %v2216_v26 }
 0x110   :  { %1984 = vmatprep.subr.bf16.mxu1 %v2217_v28 }
 0x113   :  { %1985 = vmatpush3.bf16.msra.mxu1 %v2217_v28 }
 0x114   :  { %1986 = vmatprep.subr.bf16.mxu1 %v2218_v29 }
 0x117   :  { %1987 = vmatpush3.bf16.msra.mxu1 %v2218_v29 }
 0x118   :  { %1988 = vmatprep.subr.bf16.mxu1 %v2219_v30 }
 0x11b   :  { %1989 = vmatpush3.bf16.msra.mxu1 %v2219_v30 }
 0x11c   :  { %2014 = vmatprep.subr.bf16.mxu1 %v2340_v1 }
 0x1d1   :  { %v251_v37 = vpop.f32.mrb[0].mxu1 }
 0x1d2   :  { %v1964_v38 = vpop.f32.mrb[1].mxu1 }
 0x1d3   :  { %v254_v39 = vpop.f32.mrb[2].mxu1 }
 0x1d4   :  { %v274_v40 = vpack.c.bf16 %v254_v39, %v251_v37  ;;  %v1965_v41 = vpop.f32.mrb[3].mxu1 }
 0x1d6   :  { %1990 = vmatprep.mubr.bf16.mxu1 %v274_v40 }
 0x1d9   :  { %v259_v42 = vpop.f32.mrb[4].mxu1 }
 0x1da   :  { %v1968_v43 = vpop.f32.mrb[5].mxu1 }
 0x1db   :  { %v262_v44 = vpop.f32.mrb[6].mxu1 }
 0x1dc   :  { %v275_v46 = vpack.c.bf16 %v262_v44, %v259_v42  ;;  %v1969_v47 = vpop.f32.mrb[7].mxu1 }
 0x1de   :  { %1991 = vmatmul.mubr.bf16.vlgmr.msra.gmra.mrb[12].mxu1 %v275_v46 }
 0x1df   :  { %2015 = vmatpush3.bf16.msra.mxu1 %v2220_v45  ;;  %2030 = vmatprep.mubr.msk.bf16.mxu1 %vm2341_vm0, %v2340_v1 }
 0x1e0   :  { %2016 = vmatprep.subr.bf16.mxu1 %v2340_v1 }
 0x1e1   :  { %v267_v49 = vpop.f32.mrb[8].mxu1 }
 0x1e2   :  { %v1972_v50 = vpop.f32.mrb[9].mxu1 }
 0x1e3   :  { %2017 = vmatpush3.bf16.msra.mxu1 %v2221_v48  ;;  %v270_v52 = vpop.f32.mrb[10].mxu1 }
 0x1e4   :  { %2018 = vmatprep.subr.bf16.mxu1 %v2340_v1  ;;  %v276_v53 = vpack.c.bf16 %v270_v52, %v267_v49  ;;  %v1973_v54 = vpop.f32.mrb[11].mxu1 }
 0x1e5   :  { %v1686_v54 = vld [vmem:[%s2870_s8 + $0x1] ss:$0 sm:$0xff] }
 0x1e7   :  { %2019 = vmatpush3.bf16.msra.mxu1 %v2222_v51 }
 0x1e8   :  { %2020 = vmatprep.subr.bf16.mxu1 %v2340_v1 }
 0x1eb   :  { %2021 = vmatpush3.bf16.msra.mxu1 %v2223_v55 }
 0x1ec   :  { %2022 = vmatprep.subr.bf16.mxu1 %v2340_v1 }
 0x1ef   :  { %2023 = vmatpush3.bf16.msra.mxu1 %v2224_v56 }
 0x1f0   :  { %2024 = vmatprep.subr.bf16.mxu1 %v2340_v1 }
 0x1f3   :  { %2025 = vmatpush3.bf16.msra.mxu1 %v2225_v57 }
 0x1f4   :  { %2026 = vmatprep.subr.bf16.mxu1 %v2340_v1 }
 0x1f7   :  { %2027 = vmatpush3.bf16.msra.mxu1 %v2226_v58 }
 0x1f8   :  { %2028 = vmatprep.subr.bf16.mxu1 %v2340_v1 }
 0x1fb   :  { %2029 = vmatpush3.bf16.msra.mxu1 %v2227_v59 }
 0x1fc   :  { %2054 = vmatprep.subr.bf16.mxu1 %v2340_v1 }
 0x1fe   :  { %2031 = vmatmul.mubr.bf16.vlgmr.msra.gmra.mrb[16].mxu1 %v276_v53 }
 0x1ff   :  { %2060 = vmatprep.mubr.msk.bf16.mxu1 %vm2341_vm0, %v2340_v1 }
 0x2b1   :  { %v1992_v63 = vpop.f32.mrb[12].mxu1 }
 0x2b2   :  { %v391_v0 = vadd.f32 %v1992_v63, %v1625_v62  ;;  %v382_v2 = vpop.f32.mrb[13].mxu1 }
 0x2b3   :  { %v383_v3 = vadd.f32 %v1625_v62, %v382_v2  ;;  %v1993_v4 = vpop.f32.mrb[14].mxu1  ;;  %v2244_v2 = vld [vmem:[%s2867_s5 + $0x80] sm:$0xff]  }
 0x2b4   :  { %v394_v5 = vadd.f32 %v1993_v4, %v1625_v62  ;;  %v385_v6 = vpop.f32.mrb[15].mxu1  ;;  %v399_v8 = vmax.f32 %v391_v0, 0.0  ;;  %v2245_v4 = vld [vmem:[%s2867_s5 + $0x88] sm:$0xff]  }
 0x2b5   :  { %v386_v7 = vadd.f32 %v1625_v62, %v385_v6  ;;  %v397_v10 = vmax.f32 %v383_v3, 0.0  ;;  %v2247_v6 = vld [vmem:[%s2867_s5 + $0x98] sm:$0xff]  }
 0x2b6   :  { %v400_v9 = vmax.f32 %v394_v5, 0.0  ;;  %v2246_v5 = vld [vmem:[%s2867_s5 + $0x90] sm:$0xff]  }
 0x2b7   :  { %v398_v11 = vmax.f32 %v386_v7, 0.0  ;;  %v2249_v7 = vld [vmem:[%s2867_s5 + $0xa8] sm:$0xff]  }
 0x2b8   :  { %v402_v12 = vpack.c.bf16 %v400_v9, %v399_v8  ;;  %v2251_v8 = vld [vmem:[%s2867_s5 + $0xb8] sm:$0xff]   ;;  %v2261_v9 = vld [vmem:[%s2869_s7 + $0x88] sm:$0xff]  }
 0x2b9   :  { %v401_v13 = vpack.c.bf16 %v398_v11, %v397_v10  ;;  %v2262_v10 = vld [vmem:[%s2869_s7 + $0x90] sm:$0xff]   ;;  %v2263_v11 = vld [vmem:[%s2869_s7 + $0x98] sm:$0xff]  }
 0x2bb   :  { %2010 = vmatprep.mubr.bf16.mxu0 %v401_v13  ;;  %v2265_v13 = vld [vmem:[%s2869_s7 + $0xa8] sm:$0xff]  }
 0x2bc   :  { %2011 = vmatmul.mubr.bf16.vlgmr.msra.gmra.mrb[4].mxu0 %v402_v12  ;;  %v2264_v12 = vld [vmem:[%s2869_s7 + $0xa0] sm:$0xff]  }
 0x2bd   :  { %2035 = vmatpush3.bf16.msra.mxu0 %v2236_v14  ;;  %2050 = vmatprep.mubr.msk.bf16.mxu0 %vm2341_vm0, %v2340_v1 }
 0x2be   :  { %2036 = vmatprep.subr.bf16.mxu0 %v2340_v1 }
 0x2c1   :  { %2037 = vmatpush3.bf16.msra.mxu0 %v2237_v15 }
 0x2c2   :  { %2038 = vmatprep.subr.bf16.mxu0 %v2340_v1 }
 0x2c5   :  { %2039 = vmatpush3.bf16.msra.mxu0 %v2238_v16 }
 0x2c6   :  { %2040 = vmatprep.subr.bf16.mxu0 %v2340_v1 }
 0x2c9   :  { %2041 = vmatpush3.bf16.msra.mxu0 %v2239_v17 }
 0x2ca   :  { %2042 = vmatprep.subr.bf16.mxu0 %v2340_v1 }
 0x2cd   :  { %2043 = vmatpush3.bf16.msra.mxu0 %v2240_v18 }
 0x2ce   :  { %2044 = vmatprep.subr.bf16.mxu0 %v2340_v1 }
 0x2d1   :  { %v630_v22 = vpop.f32.mrb[16].mxu1  ;;  %2045 = vmatpush3.bf16.msra.mxu0 %v2241_v19 }
 0x2d2   :  { %v631_v25 = vadd.f32 %v1660_v20, %v630_v22  ;;  %v2032_v26 = vpop.f32.mrb[17].mxu1  ;;  %2046 = vmatprep.subr.bf16.mxu0 %v2340_v1 }
 0x2d3   :  { %v633_v28 = vpop.f32.mrb[18].mxu1 }
 0x2d4   :  { %v634_v29 = vadd.f32 %v1660_v20, %v633_v28  ;;  %v2033_v30 = vpop.f32.mrb[19].mxu1  ;;  %v637_v32 = vmax.f32 %v631_v25, 0.0  ;;  %v2253_v28 = vld [vmem:[%s2867_s5 + $0xc8] sm:$0xff]  }
 0x2d5   :  { %2047 = vmatpush3.bf16.msra.mxu0 %v2242_v23  ;;  %v2252_v23 = vld [vmem:[%s2867_s5 + $0xc0] sm:$0xff]  }
 0x2d6   :  { %v638_v33 = vmax.f32 %v634_v29, 0.0  ;;  %2048 = vmatprep.subr.bf16.mxu0 %v2340_v1 }
 0x2d8   :  { %v639_v34 = vpack.c.bf16 %v638_v33, %v637_v32 }
 0x2d9   :  { %2049 = vmatpush3.bf16.msra.mxu0 %v2243_v31  ;;  %v2254_v31 = vld [vmem:[%s2867_s5 + $0xd0] sm:$0xff]  }
 0x2dc   :  { %2051 = vmatmul.mubr.bf16.vlgmr.msra.gmra.mrb[8].mxu0 %v639_v34 }
 0x38f   :  { %v2012_v36 = vpop.f32.mrb[4].mxu0 }
 0x390   :  { %v517_v37 = vadd.f32 %v2012_v36, %v1634_v35  ;;  %v508_v38 = vpop.f32.mrb[5].mxu0  ;;  %v2256_v36 = vld [vmem:[%s2867_s5 + $0xe0] sm:$0xff]  }
 0x391   :  { %v509_v39 = vadd.f32 %v1634_v35, %v508_v38  ;;  %v2013_v40 = vpop.f32.mrb[6].mxu0  ;;  %v2258_v38 = vld [vmem:[%s2867_s5 + $0xf0] sm:$0xff]  }
 0x392   :  { %v760_v41 = vmul.f32 0.01, %v517_v37  ;;  %v520_v42 = vadd.f32 %v2013_v40, %v1634_v35  ;;  %v511_v43 = vpop.f32.mrb[7].mxu0  ;;  %vm756_vm2 = vcmp.gt.f32.partialorder %v517_v37, 0.0  ;;  %v2266_v40 = vld [vmem:[%s2869_s7 + $0xb0] sm:$0xff]  }
 0x393   :  { %v758_v44 = vmul.f32 0.01, %v509_v39  ;;  %v512_v45 = vadd.f32 %v1634_v35, %v511_v43  ;;  %vm754_vm3 = vcmp.gt.f32.partialorder %v509_v39, 0.0  ;;  %v2255_v35 = vld [vmem:[%s2867_s5 + $0xd8] sm:$0xff]   ;;  %v2277_v43 = vld [vmem:[%s2871_s9 + $0x8] sm:$0xff]  }
 0x394   :  { %vm757_vm4 = vcmp.gt.f32.partialorder %v520_v42, 0.0  ;;  %v761_v46 = vmul.f32 0.01, %v520_v42  ;;  %v764_v48 = vsel %vm756_vm2, %v517_v37, %v760_v41  ;;  %v2257_v37 = vld [vmem:[%s2867_s5 + $0xe8] sm:$0xff]   ;;  %v2267_v41 = vld [vmem:[%s2869_s7 + $0xb8] sm:$0xff]  }
 0x395   :  { %vm755_vm5 = vcmp.gt.f32.partialorder %v512_v45, 0.0  ;;  %v759_v47 = vmul.f32 0.01, %v512_v45  ;;  %v762_v50 = vsel %vm754_vm3, %v509_v39, %v758_v44  ;;  %v2259_v39 = vld [vmem:[%s2867_s5 + $0xf8] sm:$0xff]   ;;  %v2278_v44 = vld [vmem:[%s2871_s9 + $0x10] sm:$0xff]  }
 0x396   :  { %v765_v49 = vsel %vm757_vm4, %v520_v42, %v761_v46  ;;  %v2276_v42 = vld [vmem:[%s2871_s9] sm:$0xff]  }
 0x397   :  { %v767_v51 = vpack.c.bf16 %v765_v49, %v764_v48  ;;  %v763_v52 = vsel %vm755_vm5, %v512_v45, %v759_v47  ;;  %v2279_v45 = vld [vmem:[%s2871_s9 + $0x18] sm:$0xff]   ;;  %v2280_v46 = vld [vmem:[%s2871_s9 + $0x20] sm:$0xff]  }
 0x398   :  { %v766_v53 = vpack.c.bf16 %v763_v52, %v762_v50  ;;  %v1715_v47 = vld [vmem:[%s2868_s6 + $0x2] ss:$0 sm:$0xff] }
 0x39a   :  { %2055 = vmatpush3.bf16.msra.mxu1 %v766_v53 }
 0x39b   :  { %2056 = vmatprep.subr.bf16.mxu1 %v2340_v1 }
 0x39e   :  { %2057 = vmatpush3.bf16.msra.mxu1 %v767_v51 }
 0x39f   :  { %2058 = vmatprep.subr.bf16.mxu1 %v2340_v1 }
 0x3af   :  { %v747_v55 = vpop.f32.mrb[8].mxu0 }
 0x3b0   :  { %v748_v56 = vadd.f32 %v1686_v54, %v747_v55  ;;  %v2052_v57 = vpop.f32.mrb[9].mxu0 }
 0x3b1   :  { %v750_v58 = vpop.f32.mrb[10].mxu0 }
 0x3b2   :  { %v770_v59 = vmul.f32 0.01, %v748_v56  ;;  %v751_v60 = vadd.f32 %v1686_v54, %v750_v58  ;;  %v2053_v61 = vpop.f32.mrb[11].mxu0  ;;  %vm768_vm6 = vcmp.gt.f32.partialorder %v748_v56, 0.0 }
 0x3b4   :  { %vm769_vm7 = vcmp.gt.f32.partialorder %v751_v60, 0.0  ;;  %v771_v62 = vmul.f32 0.01, %v751_v60  ;;  %v772_v63 = vsel %vm768_vm6, %v748_v56, %v770_v59 }
 0x3b6   :  { %v773_v0 = vsel %vm769_vm7, %v751_v60, %v771_v62  ;;  %v2268_v62 = vld [vmem:[%s2869_s7 + $0xc0] sm:$0xff]  }
 0x3b7   :  { %v774_v3 = vpack.c.bf16 %v773_v0, %v772_v63  ;;  %v2269_v63 = vld [vmem:[%s2869_s7 + $0xc8] sm:$0xff]   ;;  %v2270_v0 = vld [vmem:[%s2869_s7 + $0xd0] sm:$0xff]  }
 0x3b9   :  { %2059 = vmatpush3.bf16.msra.mxu1 %v774_v3  ;;  %v2272_v3 = vld [vmem:[%s2869_s7 + $0xe0] sm:$0xff]  }
 0x3ba   :  { %2072 = vmatprep.subr.bf16.mxu1 %v2244_v2 }
 0x3bc   :  { %2061 = vmatmul.mubr.msk.bf16.vlgmr.msra.gmra.mrb[20].mxu1 %vm207_vm1, %v2478_v21  ;;  %v2248_v21 = vld [vmem:[%s2867_s5 + $0xa0] sm:$0xff]  }
 0x3bd   :  { %2064 = vmatprep.mubr.msk.bf16.mxu1 %vm2341_vm0, %v2340_v1  ;;  %2073 = vmatpush3.bf16.msra.mxu1 %v2244_v2  ;;  %v2271_v2 = vld [vmem:[%s2869_s7 + $0xd8] sm:$0xff]  }
 0x3be   :  { %2074 = vmatprep.subr.bf16.mxu1 %v2245_v4 }
 0x3c1   :  { %2075 = vmatpush3.bf16.msra.mxu1 %v2245_v4  ;;  %v2273_v4 = vld [vmem:[%s2869_s7 + $0xe8] sm:$0xff]  }
 0x3c2   :  { %2076 = vmatprep.subr.bf16.mxu1 %v2246_v5 }
 0x3c4   :  { %2065 = vmatmul.mubr.msk.bf16.gmra.mrb[24].mxu1 %vm207_vm1, %v2493_v24  ;;  %v2250_v24 = vld [vmem:[%s2867_s5 + $0xb0] sm:$0xff]  }
 0x3c5   :  { %2068 = vmatprep.mubr.msk.bf16.mxu1 %vm2341_vm0, %v2340_v1  ;;  %2077 = vmatpush3.bf16.msra.mxu1 %v2246_v5  ;;  %v1767_v5 = vld [vmem:[%s2868_s6 + $0x3] ss:$0 sm:$0xff] }
 0x3c6   :  { %2078 = vmatprep.subr.bf16.mxu1 %v2247_v6 }
 0x3c9   :  { %2079 = vmatpush3.bf16.msra.mxu1 %v2247_v6 }
 0x3ca   :  { %2080 = vmatprep.subr.bf16.mxu1 %v2248_v21 }
 0x3cc   :  { %2069 = vmatmul.mubr.msk.bf16.gmra.mrb[28].mxu1 %vm207_vm1, %v2508_v27  ;;  %v2260_v27 = vld [vmem:[%s2869_s7 + $0x80] sm:$0xff]  }
 0x3cd   :  { %2081 = vmatpush3.bf16.msra.mxu1 %v2248_v21  ;;  %2092 = vmatprep.subr.bf16.mxu0 %v2260_v27  ;;  %v2274_v21 = vld [vmem:[%s2869_s7 + $0xf0] sm:$0xff]  }
 0x3ce   :  { %2082 = vmatprep.subr.bf16.mxu1 %v2249_v7  ;;  %2093 = vmatpush3.bf16.msra.mxu0 %v2260_v27 }
 0x3cf   :  { %2094 = vmatprep.subr.bf16.mxu0 %v2261_v9 }
 0x3d1   :  { %2083 = vmatpush3.bf16.msra.mxu1 %v2249_v7 }
 0x3d2   :  { %2084 = vmatprep.subr.bf16.mxu1 %v2250_v24  ;;  %2095 = vmatpush3.bf16.msra.mxu0 %v2261_v9 }
 0x3d3   :  { %2096 = vmatprep.subr.bf16.mxu0 %v2262_v10 }
 0x3d5   :  { %2085 = vmatpush3.bf16.msra.mxu1 %v2250_v24 }
 0x3d6   :  { %2086 = vmatprep.subr.bf16.mxu1 %v2251_v8  ;;  %2097 = vmatpush3.bf16.msra.mxu0 %v2262_v10  ;;  %v2275_v10 = vld [vmem:[%s2869_s7 + $0xf8] sm:$0xff]  }
 0x3d7   :  { %2098 = vmatprep.subr.bf16.mxu0 %v2263_v11 }
 0x3d9   :  { %2087 = vmatpush3.bf16.msra.mxu1 %v2251_v8 }
 0x3da   :  { %2112 = vmatprep.subr.bf16.mxu1 %v2340_v1  ;;  %2099 = vmatpush3.bf16.msra.mxu0 %v2263_v11 }
 0x3db   :  { %2100 = vmatprep.subr.bf16.mxu0 %v2264_v12 }
 0x3de   :  { %2101 = vmatpush3.bf16.msra.mxu0 %v2264_v12 }
 0x3df   :  { %2102 = vmatprep.subr.bf16.mxu0 %v2265_v13 }
 0x3e2   :  { %2103 = vmatpush3.bf16.msra.mxu0 %v2265_v13 }
 0x3e3   :  { %2104 = vmatprep.subr.bf16.mxu0 %v2266_v40 }
 0x3e6   :  { %2105 = vmatpush3.bf16.msra.mxu0 %v2266_v40 }
 0x3e7   :  { %2106 = vmatprep.subr.bf16.mxu0 %v2267_v41 }
 0x3ea   :  { %2107 = vmatpush3.bf16.msra.mxu0 %v2267_v41 }
 0x3eb   :  { %2132 = vmatprep.subr.bf16.mxu0 %v2340_v1 }
 0x48f   :  { %v809_v14 = vpop.f32.mrb[20].mxu1 }
 0x490   :  { %v2062_v15 = vpop.f32.mrb[21].mxu1 }
 0x491   :  { %v812_v16 = vpop.f32.mrb[22].mxu1  ;;  %v2282_v15 = vld [vmem:[%s2871_s9 + $0x30] sm:$0xff]  }
 0x492   :  { %v832_v17 = vpack.c.bf16 %v812_v16, %v809_v14  ;;  %v2063_v18 = vpop.f32.mrb[23].mxu1  ;;  %v2281_v14 = vld [vmem:[%s2871_s9 + $0x28] sm:$0xff]   ;;  %v2283_v16 = vld [vmem:[%s2871_s9 + $0x38] sm:$0xff]  }
 0x493   :  { %v2285_v18 = vld [vmem:[%s2873_s11 + $0x8] sm:$0xff]  }
 0x494   :  { %2088 = vmatprep.mubr.bf16.mxu1 %v832_v17  ;;  %v2284_v17 = vld [vmem:[%s2873_s11] sm:$0xff]  }
 0x497   :  { %v817_v19 = vpop.f32.mrb[24].mxu1 }
 0x498   :  { %v2066_v20 = vpop.f32.mrb[25].mxu1 }
 0x499   :  { %v820_v22 = vpop.f32.mrb[26].mxu1  ;;  %v2287_v20 = vld [vmem:[%s2873_s11 + $0x18] sm:$0xff]  }
 0x49a   :  { %v833_v25 = vpack.c.bf16 %v820_v22, %v817_v19  ;;  %v2067_v26 = vpop.f32.mrb[27].mxu1  ;;  %v2286_v19 = vld [vmem:[%s2873_s11 + $0x10] sm:$0xff]   ;;  %v2288_v22 = vld [vmem:[%s2873_s11 + $0x20] sm:$0xff]  }
 0x49b   :  { %v2291_v26 = vld [vmem:[%s2873_s11 + $0x38] sm:$0xff]  }
 0x49c   :  { %2089 = vmatmul.mubr.bf16.vlgmr.msra.gmra.mrb[32].mxu1 %v833_v25  ;;  %v2290_v25 = vld [vmem:[%s2873_s11 + $0x30] sm:$0xff]  }
 0x49d   :  { %2113 = vmatpush3.bf16.msra.mxu1 %v2252_v23  ;;  %2128 = vmatprep.mubr.msk.bf16.mxu1 %vm2341_vm0, %v2340_v1  ;;  %v2289_v23 = vld [vmem:[%s2873_s11 + $0x28] sm:$0xff]  }
 0x49e   :  { %2114 = vmatprep.subr.bf16.mxu1 %v2340_v1 }
 0x49f   :  { %v825_v29 = vpop.f32.mrb[28].mxu1 }
 0x4a0   :  { %v2070_v30 = vpop.f32.mrb[29].mxu1 }
 0x4a1   :  { %2115 = vmatpush3.bf16.msra.mxu1 %v2253_v28  ;;  %v828_v32 = vpop.f32.mrb[30].mxu1  ;;  %v1741_v28 = vld [vmem:[%s2870_s8 + $0x2] ss:$0 sm:$0xff] }
 0x4a2   :  { %2116 = vmatprep.subr.bf16.mxu1 %v2340_v1  ;;  %v834_v33 = vpack.c.bf16 %v828_v32, %v825_v29  ;;  %v2071_v34 = vpop.f32.mrb[31].mxu1 }
 0x4a5   :  { %2117 = vmatpush3.bf16.msra.mxu1 %v2254_v31 }
 0x4a6   :  { %2118 = vmatprep.subr.bf16.mxu1 %v2340_v1 }
 0x4a9   :  { %2119 = vmatpush3.bf16.msra.mxu1 %v2255_v35 }
 0x4aa   :  { %2120 = vmatprep.subr.bf16.mxu1 %v2340_v1 }
 0x4ad   :  { %2121 = vmatpush3.bf16.msra.mxu1 %v2256_v36 }
 0x4ae   :  { %2122 = vmatprep.subr.bf16.mxu1 %v2340_v1 }
 0x4b1   :  { %2123 = vmatpush3.bf16.msra.mxu1 %v2257_v37 }
 0x4b2   :  { %2124 = vmatprep.subr.bf16.mxu1 %v2340_v1 }
 0x4b5   :  { %2125 = vmatpush3.bf16.msra.mxu1 %v2258_v38 }
 0x4b6   :  { %2126 = vmatprep.subr.bf16.mxu1 %v2340_v1 }
 0x4b9   :  { %2127 = vmatpush3.bf16.msra.mxu1 %v2259_v39 }
 0x4ba   :  { %2152 = vmatprep.subr.bf16.mxu1 %v2276_v42 }
 0x4bc   :  { %2129 = vmatmul.mubr.bf16.vlgmr.msra.gmra.mrb[36].mxu1 %v834_v33 }
 0x4bd   :  { %2153 = vmatpush3.bf16.msra.mxu1 %v2276_v42 }
 0x4be   :  { %2154 = vmatprep.subr.bf16.mxu1 %v2277_v43 }
 0x4c1   :  { %2155 = vmatpush3.bf16.msra.mxu1 %v2277_v43 }
 0x4c2   :  { %2156 = vmatprep.subr.bf16.mxu1 %v2278_v44 }
 0x4c5   :  { %2157 = vmatpush3.bf16.msra.mxu1 %v2278_v44 }
 0x4c6   :  { %2158 = vmatprep.subr.bf16.mxu1 %v2279_v45 }
 0x4c9   :  { %2159 = vmatpush3.bf16.msra.mxu1 %v2279_v45 }
 0x4ca   :  { %2160 = vmatprep.subr.bf16.mxu1 %v2280_v46 }
 0x4cd   :  { %2161 = vmatpush3.bf16.msra.mxu1 %v2280_v46  ;;  %v1793_v46 = vld [vmem:[%s2870_s8 + $0x3] ss:$0 sm:$0xff]  ;;  %s2342_s8 = smov [#allocation2]  }
 0x4ce   :  { %2162 = vmatprep.subr.bf16.mxu1 %v2281_v14  ;;  %s1580_s25 = sshll.u32 %s2342_s8, 4  ;;  %s1581_s25 = int_to_ptr.vmem [resolvable:$true] %s1580_s25 }
 0x4cf   :  { %s2292_s7 = scalar_lea.vmem %s1581_s25, 512  ;;  %p2297_p1 = scmp.lt.s32.totalorder %s1581_s25, %s1581_s25 }
 0x4d0   :  { %p2293_p0 = scmp.ne.s32.totalorder %s1581_s25, %s2292_s7  ;;  %p2298_p2 = scmp.lt.s32.totalorder %s2292_s7, %s2292_s7 }
 0x4d1   :  { %2163 = vmatpush3.bf16.msra.mxu1 %v2281_v14 }
 0x4d2   :  { %2164 = vmatprep.subr.bf16.mxu1 %v2282_v15  ;;  %p2299_p3 = por %p2298_p2, %p2297_p1 }
 0x4d4   :  { %p2300_p4 = pnand %p2299_p3, %p2293_p0 }
 0x4d5   :  { %2165 = vmatpush3.bf16.msra.mxu1 %v2282_v15 }
 0x4d6   :  { %2166 = vmatprep.subr.bf16.mxu1 %v2283_v16 }
 0x4d9   :  { %2167 = vmatpush3.bf16.msra.mxu1 %v2283_v16 }
 0x56f   :  { %v2090_v48 = vpop.f32.mrb[32].mxu1 }
 0x570   :  { %v951_v49 = vadd.f32 %v2090_v48, %v1715_v47  ;;  %v942_v50 = vpop.f32.mrb[33].mxu1 }
 0x571   :  { %v943_v51 = vadd.f32 %v1715_v47, %v942_v50  ;;  %v2091_v52 = vpop.f32.mrb[34].mxu1 }
 0x572   :  { %v954_v53 = vadd.f32 %v2091_v52, %v1715_v47  ;;  %v945_v54 = vpop.f32.mrb[35].mxu1  ;;  %v959_v56 = vmax.f32 %v951_v49, 0.0 }
 0x573   :  { %v946_v55 = vadd.f32 %v1715_v47, %v945_v54  ;;  %v957_v58 = vmax.f32 %v943_v51, 0.0 }
 0x574   :  { %v960_v57 = vmax.f32 %v954_v53, 0.0 }
 0x575   :  { %v958_v59 = vmax.f32 %v946_v55, 0.0 }
 0x576   :  { %v962_v60 = vpack.c.bf16 %v960_v57, %v959_v56 }
 0x577   :  { %v961_v61 = vpack.c.bf16 %v958_v59, %v957_v58  ;;  %v1802_v58 = vld [vmem:[%s2872_s10] ss:$0 sm:$0xff] }
 0x579   :  { %2108 = vmatprep.mubr.bf16.mxu0 %v961_v61 }
 0x57a   :  { %2109 = vmatmul.mubr.bf16.vlgmr.msra.gmra.mrb[12].mxu0 %v962_v60 }
 0x57b   :  { %2133 = vmatpush3.bf16.msra.mxu0 %v2268_v62  ;;  %2148 = vmatprep.mubr.msk.bf16.mxu0 %vm2341_vm0, %v2340_v1 }
 0x57c   :  { %2134 = vmatprep.subr.bf16.mxu0 %v2340_v1 }
 0x57f   :  { %2135 = vmatpush3.bf16.msra.mxu0 %v2269_v63 }
 0x580   :  { %2136 = vmatprep.subr.bf16.mxu0 %v2340_v1 }
 0x583   :  { %2137 = vmatpush3.bf16.msra.mxu0 %v2270_v0 }
 0x584   :  { %2138 = vmatprep.subr.bf16.mxu0 %v2340_v1 }
 0x587   :  { %2139 = vmatpush3.bf16.msra.mxu0 %v2271_v2 }
 0x588   :  { %2140 = vmatprep.subr.bf16.mxu0 %v2340_v1 }
 0x58b   :  { %2141 = vmatpush3.bf16.msra.mxu0 %v2272_v3 }
 0x58c   :  { %2142 = vmatprep.subr.bf16.mxu0 %v2340_v1 }
 0x58f   :  { %v1192_v6 = vpop.f32.mrb[36].mxu1  ;;  %2143 = vmatpush3.bf16.msra.mxu0 %v2273_v4 }
 0x590   :  { %v1193_v7 = vadd.f32 %v1767_v5, %v1192_v6  ;;  %v2130_v24 = vpop.f32.mrb[37].mxu1  ;;  %2144 = vmatprep.subr.bf16.mxu0 %v2340_v1 }
 0x591   :  { %v1195_v8 = vpop.f32.mrb[38].mxu1 }
 0x592   :  { %v1196_v27 = vadd.f32 %v1767_v5, %v1195_v8  ;;  %v2131_v9 = vpop.f32.mrb[39].mxu1  ;;  %v1199_v11 = vmax.f32 %v1193_v7, 0.0 }
 0x593   :  { %2145 = vmatpush3.bf16.msra.mxu0 %v2274_v21 }
 0x594   :  { %v1200_v12 = vmax.f32 %v1196_v27, 0.0  ;;  %2146 = vmatprep.subr.bf16.mxu0 %v2340_v1 }
 0x596   :  { %v1201_v13 = vpack.c.bf16 %v1200_v12, %v1199_v11 }
 0x597   :  { %2147 = vmatpush3.bf16.msra.mxu0 %v2275_v10 }
 0x598   :  { %2172 = vmatprep.subr.bf16.mxu0 %v2340_v1 }
 0x59a   :  { %2149 = vmatmul.mubr.bf16.vlgmr.msra.gmra.mrb[16].mxu0 %v1201_v13 }
 0x59b   :  { %2188 = vmatprep.mubr.msk.bf16.mxu0 %vm2341_vm0, %v2340_v1  ;;  %2173 = vmatpush3.bf16.msra.mxu0 %v2284_v17 }
 0x59c   :  { %2174 = vmatprep.subr.bf16.mxu0 %v2340_v1 }
 0x59f   :  { %2175 = vmatpush3.bf16.msra.mxu0 %v2285_v18 }
 0x5a0   :  { %2176 = vmatprep.subr.bf16.mxu0 %v2340_v1 }
 0x5a3   :  { %2177 = vmatpush3.bf16.msra.mxu0 %v2286_v19 }
 0x5a4   :  { %2178 = vmatprep.subr.bf16.mxu0 %v2340_v1 }
 0x5a7   :  { %2179 = vmatpush3.bf16.msra.mxu0 %v2287_v20 }
 0x5a8   :  { %2180 = vmatprep.subr.bf16.mxu0 %v2340_v1 }
 0x5ab   :  { %2181 = vmatpush3.bf16.msra.mxu0 %v2288_v22 }
 0x5ac   :  { %2182 = vmatprep.subr.bf16.mxu0 %v2340_v1 }
 0x5af   :  { %2183 = vmatpush3.bf16.msra.mxu0 %v2289_v23 }
 0x5b0   :  { %2184 = vmatprep.subr.bf16.mxu0 %v2340_v1 }
 0x5b3   :  { %2185 = vmatpush3.bf16.msra.mxu0 %v2290_v25 }
 0x5b4   :  { %2186 = vmatprep.subr.bf16.mxu0 %v2340_v1 }
 0x5b7   :  { %2187 = vmatpush3.bf16.msra.mxu0 %v2291_v26 }
 0x64d   :  { %v2110_v29 = vpop.f32.mrb[12].mxu0 }
 0x64e   :  { %v1079_v30 = vadd.f32 %v2110_v29, %v1741_v28  ;;  %v1070_v31 = vpop.f32.mrb[13].mxu0 }
 0x64f   :  { %v1071_v32 = vadd.f32 %v1741_v28, %v1070_v31  ;;  %v2111_v33 = vpop.f32.mrb[14].mxu0 }
 0x650   :  { %v1322_v34 = vmul.f32 0.01, %v1079_v30  ;;  %v1082_v35 = vadd.f32 %v2111_v33, %v1741_v28  ;;  %v1073_v36 = vpop.f32.mrb[15].mxu0  ;;  %vm1318_vm8 = vcmp.gt.f32.partialorder %v1079_v30, 0.0 }
 0x651   :  { %v1320_v37 = vmul.f32 0.01, %v1071_v32  ;;  %v1074_v1 = vadd.f32 %v1741_v28, %v1073_v36  ;;  %vm1316_vm9 = vcmp.gt.f32.partialorder %v1071_v32, 0.0 }
 0x652   :  { %vm1319_vm10 = vcmp.gt.f32.partialorder %v1082_v35, 0.0  ;;  %v1323_v38 = vmul.f32 0.01, %v1082_v35  ;;  %v1326_v40 = vsel %vm1318_vm8, %v1079_v30, %v1322_v34 }
 0x653   :  { %vm1317_vm11 = vcmp.gt.f32.partialorder %v1074_v1, 0.0  ;;  %v1321_v39 = vmul.f32 0.01, %v1074_v1  ;;  %v1324_v43 = vsel %vm1316_vm9, %v1071_v32, %v1320_v37 }
 0x654   :  { %v1327_v41 = vsel %vm1319_vm10, %v1082_v35, %v1323_v38 }
 0x655   :  { %v1329_v42 = vpack.c.bf16 %v1327_v41, %v1326_v40  ;;  %v1325_v44 = vsel %vm1317_vm11, %v1074_v1, %v1321_v39 }
 0x656   :  { %v1328_v45 = vpack.c.bf16 %v1325_v44, %v1324_v43 }
 0x658   :  { %2168 = vmatprep.mubr.bf16.mxu1 %v1328_v45 }
 0x659   :  { %2169 = vmatmul.mubr.bf16.vlgmr.msra.gmra.mrb[40].mxu1 %v1329_v42 }
 0x66d   :  { %v1309_v47 = vpop.f32.mrb[16].mxu0 }
 0x66e   :  { %v1310_v48 = vadd.f32 %v1793_v46, %v1309_v47  ;;  %v2150_v49 = vpop.f32.mrb[17].mxu0 }
 0x66f   :  { %v1312_v50 = vpop.f32.mrb[18].mxu0 }
 0x670   :  { %v1332_v51 = vmul.f32 0.01, %v1310_v48  ;;  %v1313_v52 = vadd.f32 %v1793_v46, %v1312_v50  ;;  %v2151_v53 = vpop.f32.mrb[19].mxu0  ;;  %vm1330_vm12 = vcmp.gt.f32.partialorder %v1310_v48, 0.0 }
 0x672   :  { %vm1331_vm13 = vcmp.gt.f32.partialorder %v1313_v52, 0.0  ;;  %v1333_v54 = vmul.f32 0.01, %v1313_v52  ;;  %v1334_v55 = vsel %vm1330_vm12, %v1310_v48, %v1332_v51 }
 0x674   :  { %v1335_v56 = vsel %vm1331_vm13, %v1313_v52, %v1333_v54 }
 0x675   :  { %v1336_v57 = vpack.c.bf16 %v1335_v56, %v1334_v55 }
 0x677   :  { %2189 = vmatmul.mubr.bf16.vlgmr.msra.gmra.mrb[20].mxu0 %v1336_v57 }
 0x72c   :  { %v2170_v59 = vpop.f32.mrb[40].mxu1 }
 0x72d   :  { %v1451_v60 = vadd.f32 %v2170_v59, %v1802_v58  ;;  %v1442_v61 = vpop.f32.mrb[41].mxu1 }
 0x72e   :  { %v1443_v62 = vadd.f32 %v1802_v58, %v1442_v61  ;;  %v2171_v63 = vpop.f32.mrb[42].mxu1 }
 0x72f   :  { %1459 = vst [vmem:[#allocation2 + $0x10] sm:$0xff] %v1451_v60  ;;  %v1454_v0 = vadd.f32 %v2171_v63, %v1802_v58  ;;  %v1445_v2 = vpop.f32.mrb[43].mxu1 }
 0x730   :  { %1457 = vst [vmem:[#allocation2] sm:$0xff] %v1443_v62  ;;  %v1446_v3 = vadd.f32 %v1802_v58, %v1445_v2 }
 0x731   :  { %1460 = vst [vmem:[#allocation2 + $0x18] sm:$0xff] %v1454_v0 }
 0x732   :  { %1458 = vst [vmem:[#allocation2 + $0x8] sm:$0xff] %v1446_v3 }
 0x733   :  { %2303 = shalt.err (!%p2300_p4)
}
 0x734   :  { %s2304_s27 = scalar_lea.hbm %s2875_s13, 512 }
 0x735   :  { %p2305_p5 = scmp.ne.s32.totalorder %s2875_s13, %s2304_s27  ;;  %p2308_p6 = scmp.lt.u32.totalorder %s2304_s27, %s2875_s13 }
 0x737   :  { %p2310_p7 = pnand %p2308_p6, %p2305_p5 }
 0x739   :  { %2313 = shalt.err (!%p2310_p7)
}
 0x73a   :  { %s2343_s16 = smov 128   ;;  %s2344_s17 = smov 8   ;;  %v1811_v4 = vld [vmem:[%s2874_s12] ss:$0 sm:$0xff] }
 0x73b   :  { %1586 = dma.vmem_to_hbm [thread:$0]  %s1581_s25, 512, %s2875_s13, [#allocation3], %s2343_s16, %s2343_s16, %s2344_s17  }
 0x73c   :  { %s2345_s0 = smov [#allocation4]  }
 0x73d   :  { %s1592_s2 = sshll.u32 %s2345_s0, 4  ;;  %s1593_s2 = int_to_ptr.vmem [resolvable:$true] %s1592_s2 }
 0x73e   :  { %s2314_s5 = scalar_lea.vmem %s1593_s2, 256  ;;  %p2319_p9 = scmp.lt.s32.totalorder %s1593_s2, %s1593_s2 }
 0x73f   :  { %p2315_p8 = scmp.ne.s32.totalorder %s1593_s2, %s2314_s5  ;;  %p2320_p10 = scmp.lt.s32.totalorder %s2314_s5, %s2314_s5 }
 0x741   :  { %p2321_p11 = por %p2320_p10, %p2319_p9 }
 0x743   :  { %p2322_p12 = pnand %p2321_p11, %p2315_p8 }
 0x74a   :  { %v1566_v5 = vpop.f32.mrb[20].mxu0 }
 0x74b   :  { %v1567_v6 = vadd.f32 %v1811_v4, %v1566_v5  ;;  %v2190_v21 = vpop.f32.mrb[21].mxu0 }
 0x74c   :  { %v1569_v7 = vpop.f32.mrb[22].mxu0 }
 0x74d   :  { %1573 = vst [vmem:[#allocation4] sm:$0xff] %v1567_v6  ;;  %v1570_v24 = vadd.f32 %v1811_v4, %v1569_v7  ;;  %v2191_v8 = vpop.f32.mrb[23].mxu0 }
 0x74f   :  { %1574 = vst [vmem:[#allocation4 + $0x8] sm:$0xff] %v1570_v24 }
 0x750   :  { %2325 = shalt.err (!%p2322_p12)
}
 0x751   :  { %s2326_s3 = scalar_lea.hbm %s2876_s14, 256 }
 0x752   :  { %p2327_p13 = scmp.ne.s32.totalorder %s2876_s14, %s2326_s3  ;;  %p2330_p0 = scmp.lt.u32.totalorder %s2326_s3, %s2876_s14 }
 0x754   :  { %p2332_p1 = pnand %p2330_p0, %p2327_p13 }
 0x756   :  { %2335 = shalt.err (!%p2332_p1)
}
 0x757   :  { %1598 = dma.vmem_to_hbm [thread:$0]  %s1593_s2, 256, %s2876_s14, [#allocation5], %s2343_s16, %s2343_s16, %s2344_s17  }
 0x758   :  { %2336 = dma.done.wait [#allocation3], 512  }
 0x759   :  { %2337 = vsyncadd [#allocation3], 4294966784 }
 0x75a   :  { %2338 = dma.done.wait [#allocation5], 256  }
 0x75b   :  { %2339 = vsyncadd [#allocation5], 4294967040 }
 0x75c   :  { %1605 = vsyncpa [#allocation3], 1 }
 0x75d   :  { %1606 = vsyncpa [#allocation5], 1 }

</bundles_post_ra>
